<compile_context>
chip_gen: v6e
topology: v6e:2x2x1
jax: 0.10.0
libtpu: 0.0.40
codegen_flags: <defaults>
</compile_context>

<pallas_src>
import functools

import jax
import jax.numpy as jnp
from jax.experimental import pallas as pl
from jax.experimental.pallas import tpu as pltpu


def _round_up(x, m):
    return ((x + m - 1) // m) * m


def _vmem_capacity_bytes():
    """Physical VMEM per TensorCore; conservative fallback if the query fails."""
    try:
        info = pltpu.get_tpu_info()
        cap = getattr(info, "vmem_capacity_bytes", None)
        if cap:
            return int(cap)
    except Exception:
        pass
    return 64 << 20  # v7x-sized conservative default


def _crf_mf_kernel(probe_ref, pw_ref, arow_ref, out_ref, *, layer_num):
    """Mean-field CRF update for one probe tile.

    probe_ref : VMEM (TP, G) f32   -> probe tile
    pw_ref    : VMEM (G, G) bf16   -> column-scaled pairwise (resident)
    arow_ref  : VMEM (1, G)  f32   -> alpha / normalizes (resident)
    out_ref   : VMEM (TP, G) f32
    """
    probe = probe_ref[...]                 # f32 (TP, G)
    pa = probe * arow_ref[...]             # probe * alpha / normalizes (hoisted)
    pw = pw_ref[...]                       # bf16 (G, G)

    # layer_num is a static Python int -> unrolled; each iteration is one bf16
    # MXU matmul (f32 accumulation) plus a single f32 VPU add.  The first
    # iteration's cast is hoisted (probe cast once).
    mu = pa + jnp.dot(probe.astype(jnp.bfloat16), pw,
                      preferred_element_type=jnp.float32)
    for _ in range(layer_num - 1):
        mu = pa + jnp.dot(mu.astype(jnp.bfloat16), pw,
                          preferred_element_type=jnp.float32)
    out_ref[...] = mu.astype(out_ref.dtype)


def crf_mf_forward(probescore, galleryscore, weights, unary_num=1, pair_num=1,
                   layer_num=3, max_tile_p=512):
    """JAX/Pallas equivalent of CRF_MF.forward."""
    assert unary_num == 1 and pair_num == 1, "expand_as requires scalar alpha/beta"
    assert galleryscore.shape[0] == galleryscore.shape[1]
    assert probescore.shape[1] == galleryscore.shape[0]

    p, g = probescore.shape
    out_dtype = probescore.dtype

    if layer_num <= 0:
        return probescore

    # ---- One-time preprocessing in XLA (hoisted out of the kernel). -------
    sw = jax.nn.softmax(weights.astype(jnp.float32))
    alpha = sw[0]
    beta = sw[1]
    gal = galleryscore.astype(jnp.float32)
    offdiag = gal - jnp.diag(jnp.diag(gal))
    # Reference divides by (G-1); guard the degenerate G==1 case (ref -> NaN).
    inv_nm1 = 1.0 / float(max(g - 1, 1))
    colsum = jnp.sum(offdiag, axis=0) * inv_nm1            # (G,)
    inv_norm = 1.0 / (alpha + beta * colsum)                # exact reciprocal (f32)
    arow = (alpha * inv_norm)[None, :]                      # (1, G) f32
    # Fold beta, 1/(G-1) and 1/normalizes into the pairwise columns, once,
    # then cast to bf16 for MXU-native matmuls in the kernel.
    pw = (offdiag * (beta * inv_nm1 * inv_norm)[None, :]).astype(jnp.bfloat16)

    # ---- TPU-friendly padding (lane dim multiple of 128, sublanes of 8). --
    # Zero padding is exact: padded pw columns/rows, arow entries, and probe
    # rows are zero, so the real output region is untouched; final slice trims.
    g_pad = _round_up(g, 128)
    p_aligned = _round_up(p, 8)

    # ---- Generation-aware VMEM budget & probe tile size. ------------------
    vmem_cap = _vmem_capacity_bytes()
    cap_limit = max(int(vmem_cap * 0.85), 24 << 20)   # ~108 MiB on 128 MiB parts,
    #                                                  # ~54 MiB on v7x's 64 MiB.
    pw_bytes = 2 * g_pad * g_pad * 2                  # bf16 pw, 2 pipeline buffers
    arow_bytes = 2 * g_pad * 4
    headroom = 4 << 20
    budget = cap_limit - pw_bytes - arow_bytes - headroom
    bytes_per_probe_row = 2 * 2 * g_pad * 4           # probe + out, double-buffered
    if budget <= bytes_per_probe_row * 8:
        # TODO(synk): for very large G on v7x (resident bf16 pw no longer fits
        # in 64 MiB), add a K-tiled fallback that streams (G, Gk) pw blocks via
        # pltpu.emit_pipeline instead of keeping pw resident.
        tile_cap = 8
    else:
        tile_cap = (budget // bytes_per_probe_row) // 8 * 8
    tile_p = int(min(max_tile_p, p_aligned, max(8, tile_cap)))
    tile_p = max(8, (tile_p // 8) * 8)
    p_pad = _round_up(p_aligned, tile_p)

    probe_p = jnp.pad(probescore.astype(jnp.float32),
                      ((0, p_pad - p), (0, g_pad - g)))
    pw_p = jnp.pad(pw, ((0, g_pad - g), (0, g_pad - g)))
    arow_p = jnp.pad(arow, ((0, 0), (0, g_pad - g)))

    vmem_bytes = pw_bytes + arow_bytes + 2 * 2 * tile_p * g_pad * 4
    vmem_limit = int(min(max(vmem_bytes + headroom, 32 << 20), cap_limit))

    kernel = functools.partial(_crf_mf_kernel, layer_num=layer_num)

    out = pl.pallas_call(
        kernel,
        out_shape=jax.ShapeDtypeStruct((p_pad, g_pad), jnp.float32),
        grid=(p_pad // tile_p,),
        in_specs=[
            pl.BlockSpec((tile_p, g_pad), lambda i: (i, 0)),   # probe tile
            pl.BlockSpec((g_pad, g_pad), lambda i: (0, 0)),    # pw (bf16, resident)
            pl.BlockSpec((1, g_pad), lambda i: (0, 0)),        # alpha / normalizes
        ],
        out_specs=pl.BlockSpec((tile_p, g_pad), lambda i: (i, 0)),
        compiler_params=pltpu.CompilerParams(
            # No cross-grid-step state anymore -> probe tiles are independent;
            # "parallel" lets v7x's two TensorCores split the probe axis.
            dimension_semantics=("parallel",),
            vmem_limit_bytes=vmem_limit,
        ),
    )(probe_p, pw_p, arow_p)

    return out[:p, :g].astype(out_dtype)


def _crf_mf_reference(probescore, galleryscore, weights, unary_num=1,
                      pair_num=1, layer_num=3):
    """Pure-JAX reference mirroring the PyTorch forward, for verification."""
    g = galleryscore.shape[0]
    pairwise = galleryscore - jnp.diag(jnp.diag(galleryscore))
    pairwise = pairwise / (g - 1)
    sw = jax.nn.softmax(weights)
    alpha = sw[0:unary_num]
    beta = sw[unary_num:unary_num + pair_num]
    norm_simsum = jnp.sum(pairwise, axis=0)
    normalizes = alpha + beta * norm_simsum
    mu = probescore
    for _ in range(layer_num):
        mu = (probescore * alpha + (mu @ pairwise) * beta) / normalizes
    return mu


if __name__ == "__main__":
    key = jax.random.PRNGKey(0)

    # --- Case 1: small aligned shapes, module-default (zero) weights. ---
    P, G = 8, 128
    kp, kg, key = jax.random.split(key, 3)
    probescore = jax.random.normal(kp, (P, G), dtype=jnp.float32)
    galleryscore = jax.random.normal(kg, (G, G), dtype=jnp.float32)
    weights = jnp.zeros((2,), dtype=jnp.float32)   # module init: zeros

    out = crf_mf_forward(probescore, galleryscore, weights, layer_num=3)
    out = jax.block_until_ready(out)
    ref = _crf_mf_reference(probescore, galleryscore, weights, layer_num=3)
    assert out.shape == (P, G)
    # bf16 MXU operands -> tolerance loosened deliberately.
    assert jnp.allclose(out, ref, rtol=2e-2, atol=2e-2), "case 1 mismatch vs reference"

    # --- Case 2: unaligned shapes exercising padding + multi-tile grid. ---
    P2, G2 = 300, 200
    kp2, kg2, kw2 = jax.random.split(key, 3)
    probescore2 = jax.random.normal(kp2, (P2, G2), dtype=jnp.float32)
    galleryscore2 = jax.random.normal(kg2, (G2, G2), dtype=jnp.float32)
    weights2 = 0.1 * jax.random.normal(kw2, (2,), dtype=jnp.float32)

    out2 = crf_mf_forward(probescore2, galleryscore2, weights2, layer_num=3)
    out2 = jax.block_until_ready(out2)
    ref2 = _crf_mf_reference(probescore2, galleryscore2, weights2, layer_num=3)
    assert out2.shape == (P2, G2)
    assert jnp.allclose(out2, ref2, rtol=2e-2, atol=2e-2), "case 2 mismatch vs reference"

    # --- Case 3: force multiple probe tiles on the ("parallel",) grid. ---
    out3 = crf_mf_forward(probescore2, galleryscore2, weights2, layer_num=3,
                          max_tile_p=128)
    out3 = jax.block_until_ready(out3)
    assert jnp.allclose(out3, ref2, rtol=2e-2, atol=2e-2), "case 3 mismatch vs reference"

    print("KERNEL_OK")
</pallas_src>

<mosaic_0001>
module attributes {stable_mosaic.version = 11 : i64} {
  func.func @_crf_mf_kernel(%arg0: i32, %arg1: memref<8x128xf32, #tpu.memory_space<vmem>>, %arg2: memref<128x128xbf16, #tpu.memory_space<vmem>>, %arg3: memref<1x128xf32, #tpu.memory_space<vmem>>, %arg4: memref<8x128xf32, #tpu.memory_space<vmem>>) attributes {dimension_semantics = [#tpu.dimension_semantics<parallel>], iteration_bounds = array<i64: 1>, scalar_prefetch = 0 : i64, scratch_operands = 0 : i64, tpu.core_type = #tpu.core_type<tc>, window_params = [{transform_indices = @transform_0, window_bounds = array<i64: 8, 128>}, {pipeline_mode = #tpu.pipeline_mode<synchronous>, transform_indices = @transform_1, window_bounds = array<i64: 128, 128>}, {pipeline_mode = #tpu.pipeline_mode<synchronous>, transform_indices = @transform_2, window_bounds = array<i64: 1, 128>}, {transform_indices = @transform_3, window_bounds = array<i64: 8, 128>}]} {
    %c0 = arith.constant 0 : index
    %c0_0 = arith.constant 0 : index
    %0 = vector.load %arg1[%c0, %c0_0] : memref<8x128xf32, #tpu.memory_space<vmem>>, vector<8x128xf32>
    %c0_1 = arith.constant 0 : index
    %c0_2 = arith.constant 0 : index
    %1 = vector.load %arg3[%c0_1, %c0_2] : memref<1x128xf32, #tpu.memory_space<vmem>>, vector<1x128xf32>
    %2 = vector.broadcast %1 : vector<1x128xf32> to vector<8x128xf32>
    %3 = arith.mulf %0, %2 : vector<8x128xf32>
    %c0_3 = arith.constant 0 : index
    %c0_4 = arith.constant 0 : index
    %4 = vector.load %arg2[%c0_3, %c0_4] : memref<128x128xbf16, #tpu.memory_space<vmem>>, vector<128x128xbf16>
    %5 = arith.truncf %0 : vector<8x128xf32> to vector<8x128xbf16>
    %cst = arith.constant dense<0.000000e+00> : vector<8x128xf32>
    %6 = tpu.matmul %5, %4, %cst {dimension_numbers = #tpu.dot_dimension_numbers<[1], [0], [0], [1], [0, 0, 1, 1], [], []>} : vector<8x128xbf16>, vector<128x128xbf16>, vector<8x128xf32> -> vector<8x128xf32>
    %7 = arith.addf %3, %6 : vector<8x128xf32>
    %8 = arith.truncf %7 : vector<8x128xf32> to vector<8x128xbf16>
    %cst_5 = arith.constant dense<0.000000e+00> : vector<8x128xf32>
    %9 = tpu.matmul %8, %4, %cst_5 {dimension_numbers = #tpu.dot_dimension_numbers<[1], [0], [0], [1], [0, 0, 1, 1], [], []>} : vector<8x128xbf16>, vector<128x128xbf16>, vector<8x128xf32> -> vector<8x128xf32>
    %10 = arith.addf %3, %9 : vector<8x128xf32>
    %11 = arith.truncf %10 : vector<8x128xf32> to vector<8x128xbf16>
    %cst_6 = arith.constant dense<0.000000e+00> : vector<8x128xf32>
    %12 = tpu.matmul %11, %4, %cst_6 {dimension_numbers = #tpu.dot_dimension_numbers<[1], [0], [0], [1], [0, 0, 1, 1], [], []>} : vector<8x128xbf16>, vector<128x128xbf16>, vector<8x128xf32> -> vector<8x128xf32>
    %13 = arith.addf %3, %12 : vector<8x128xf32>
    %c0_7 = arith.constant 0 : index
    %c0_8 = arith.constant 0 : index
    %14 = vector.load %arg4[%c0_7, %c0_8] : memref<8x128xf32, #tpu.memory_space<vmem>>, vector<8x128xf32>
    tpu.vector_store %arg4[%c0_7, %c0_8], %13 {strides = array<i32>} : memref<8x128xf32, #tpu.memory_space<vmem>>, vector<8x128xf32>,
    return
  }
  func.func @transform_0(%arg0: i32) -> (i32, i32) {
    %c0_i32 = arith.constant 0 : i32
    %c0_i32_0 = arith.constant 0 : i32
    return %arg0, %c0_i32 : i32, i32
  }
  func.func @transform_1(%arg0: i32) -> (i32, i32) {
    %c0_i32 = arith.constant 0 : i32
    %c0_i32_0 = arith.constant 0 : i32
    %c0_i32_1 = arith.constant 0 : i32
    return %c0_i32, %c0_i32_0 : i32, i32
  }
  func.func @transform_2(%arg0: i32) -> (i32, i32) {
    %c0_i32 = arith.constant 0 : i32
    %c0_i32_0 = arith.constant 0 : i32
    %c0_i32_1 = arith.constant 0 : i32
    return %c0_i32, %c0_i32_0 : i32, i32
  }
  func.func @transform_3(%arg0: i32) -> (i32, i32) {
    %c0_i32 = arith.constant 0 : i32
    %c0_i32_0 = arith.constant 0 : i32
    return %arg0, %c0_i32 : i32, i32
  }
}

</mosaic_0001>

<bundles_post_ra>
// kernel: tpu_custom_call.1
= control target key start
LH: loop header
LB: loop body
LE: loop exit
PB: predicated region body
PF: predicated region fallthrough
CT: control target
= control target key end

     0   :  { %8 = vsyncpa [#allocation3], 0  ;;  %s477_s0 = inlined_call_operand.hbm [shape: f32[8,128], index: 0, kind: input, shape index: {}]   ;;  %s478_s1 = inlined_call_operand.hbm [shape: bf16[128,128], index: 1, kind: input, shape index: {}]   ;;  %s479_s2 = inlined_call_operand.vmem [shape: f32[1,128], index: 2, kind: input, shape index: {}]   ;;  %s480_s3 = inlined_call_operand.hbm [shape: f32[8,128], index: 3, kind: output, shape index: {}]  }
   0x1   :  { %9 = vsyncpa [#allocation6], 0 }
   0x2   :  { %10 = vsyncpa [#allocation4], 0  ;;  %s435_s12 = smov [#allocation2]   ;;  %s436_s14 = smov [#allocation5]  }
   0x3   :  { %s17_s13 = sshll.u32 %s435_s12, 4  ;;  %s26_s15 = sshll.u32 %s436_s14, 4  ;;  %s18_s13 = int_to_ptr.vmem [resolvable:$true] %s17_s13  ;;  %s27_s15 = int_to_ptr.vmem [resolvable:$true] %s26_s15 }
   0x4   :  { %s377_s16 = scalar_lea.vmem %s18_s13, 128  ;;  %p382_p1 = scmp.lt.s32.totalorder %s18_s13, %s18_s13 }
   0x5   :  { %p378_p0 = scmp.ne.s32.totalorder %s18_s13, %s377_s16  ;;  %p383_p2 = scmp.lt.s32.totalorder %s377_s16, %s377_s16 }
   0x7   :  { %p384_p3 = por %p383_p2, %p382_p1 }
   0x9   :  { %p385_p4 = pnand %p384_p3, %p378_p0 }
   0xb   :  { %388 = shalt.err (!%p385_p4)
}
   0xc   :  { %20 = dma.hbm_to_vmem [thread:$0]  %s477_s0, 128, %s18_s13, [#allocation3]  }
   0xd   :  { %s397_s19 = scalar_lea.vmem %s27_s15, 1024  ;;  %p402_p6 = scmp.lt.s32.totalorder %s27_s15, %s27_s15 }
   0xe   :  { %p398_p5 = scmp.ne.s32.totalorder %s27_s15, %s397_s19  ;;  %p403_p7 = scmp.lt.s32.totalorder %s397_s19, %s397_s19 }
  0x10   :  { %p404_p8 = por %p403_p7, %p402_p6 }
  0x12   :  { %p405_p9 = pnand %p404_p8, %p398_p5 }
  0x14   :  { %408 = shalt.err (!%p405_p9)
}
  0x15   :  { %s437_s20 = smov 64   ;;  %s438_s21 = smov 4  }
  0x16   :  { %32 = dma.hbm_to_vmem [thread:$0]  %s478_s1, 1024, %s27_s15, [#allocation6], %s437_s20, %s437_s20, %s438_s21  }
  0x17   :  { %429 = dma.done.wait [#allocation3], 128  }
  0x18   :  { %430 = vsyncadd [#allocation3], 4294967168 }
  0x19   :  { %431 = dma.done.wait [#allocation6], 1024  }
  0x1a   :  { %432 = vsyncadd [#allocation6], 4294966272  ;;  %v439_v0 = vmov 0.0   ;;  %vm440_vm0 = vmmov 0   ;;  %v361_v1 = vld [vmem:[#allocation5 + $0x38] sm:$0xff]   ;;  %v362_v2 = vld [vmem:[#allocation5 + $0x30] sm:$0xff]  }
  0x1b   :  { %294 = vmatprep.subr.bf16.mxu0 %v439_v0  ;;  %310 = vmatprep.mubr.msk.bf16.mxu0 %vm440_vm0, %v439_v0  ;;  %v363_v3 = vld [vmem:[#allocation5 + $0x28] sm:$0xff]   ;;  %v364_v4 = vld [vmem:[#allocation5 + $0x20] sm:$0xff]   ;;  %v365_v5 = vld [vmem:[#allocation5 + $0x18] sm:$0xff]   ;;  %s441_s24 = smov [#allocation7]  }
  0x1c   :  { %314 = vmatprep.subr.bf16.mxu1 %v439_v0  ;;  %330 = vmatprep.mubr.msk.bf16.mxu1 %vm440_vm0, %v439_v0  ;;  %v366_v6 = vld [vmem:[#allocation5 + $0x10] sm:$0xff]   ;;  %v367_v7 = vld [vmem:[#allocation5 + $0x8] sm:$0xff]   ;;  %v368_v8 = vld [vmem:[#allocation5] sm:$0xff]   ;;  %s248_s25 = sshll.u32 %s441_s24, 4  ;;  %s249_s25 = int_to_ptr.vmem [resolvable:$true] %s248_s25 }
  0x1d   :  { %295 = vmatpush3.bf16.msra.mxu0 %v361_v1  ;;  %315 = vmatpush3.bf16.msra.mxu1 %v361_v1  ;;  %v42_v9 = vld [vmem:[#allocation2] sm:$0xff]  ;;  %p414_p11 = scmp.lt.s32.totalorder %s249_s25, %s249_s25 }
  0x1e   :  { %296 = vmatprep.subr.bf16.mxu0 %v439_v0  ;;  %316 = vmatprep.subr.bf16.mxu1 %v439_v0  ;;  %v67_v10 = vpack.c.bf16 %v42_v9, %v42_v9  ;;  %v258_v11 = vld [vmem:[%s479_s2] ss:$0 sm:$0xff]  ;;  %s409_s2 = scalar_lea.vmem %s249_s25, 128 }
  0x1f   :  { %v50_v12 = vmul.f32 %v258_v11, %v42_v9  ;;  %p410_p10 = scmp.ne.s32.totalorder %s249_s25, %s409_s2  ;;  %p415_p12 = scmp.lt.s32.totalorder %s409_s2, %s409_s2 }
  0x21   :  { %297 = vmatpush3.bf16.msra.mxu0 %v362_v2  ;;  %317 = vmatpush3.bf16.msra.mxu1 %v362_v2  ;;  %p416_p13 = por %p415_p12, %p414_p11 }
  0x22   :  { %298 = vmatprep.subr.bf16.mxu0 %v439_v0  ;;  %318 = vmatprep.subr.bf16.mxu1 %v439_v0 }
  0x23   :  { %p417_p0 = pnand %p416_p13, %p410_p10 }
  0x25   :  { %299 = vmatpush3.bf16.msra.mxu0 %v363_v3  ;;  %319 = vmatpush3.bf16.msra.mxu1 %v363_v3 }
  0x26   :  { %300 = vmatprep.subr.bf16.mxu0 %v439_v0  ;;  %320 = vmatprep.subr.bf16.mxu1 %v439_v0 }
  0x29   :  { %301 = vmatpush3.bf16.msra.mxu0 %v364_v4  ;;  %321 = vmatpush3.bf16.msra.mxu1 %v364_v4 }
  0x2a   :  { %302 = vmatprep.subr.bf16.mxu0 %v439_v0  ;;  %322 = vmatprep.subr.bf16.mxu1 %v439_v0 }
  0x2d   :  { %303 = vmatpush3.bf16.msra.mxu0 %v365_v5  ;;  %323 = vmatpush3.bf16.msra.mxu1 %v365_v5 }
  0x2e   :  { %304 = vmatprep.subr.bf16.mxu0 %v439_v0  ;;  %324 = vmatprep.subr.bf16.mxu1 %v439_v0 }
  0x31   :  { %305 = vmatpush3.bf16.msra.mxu0 %v366_v6  ;;  %325 = vmatpush3.bf16.msra.mxu1 %v366_v6 }
  0x32   :  { %306 = vmatprep.subr.bf16.mxu0 %v439_v0  ;;  %326 = vmatprep.subr.bf16.mxu1 %v439_v0 }
  0x35   :  { %307 = vmatpush3.bf16.msra.mxu0 %v367_v7  ;;  %327 = vmatpush3.bf16.msra.mxu1 %v367_v7 }
  0x36   :  { %308 = vmatprep.subr.bf16.mxu0 %v439_v0  ;;  %328 = vmatprep.subr.bf16.mxu1 %v439_v0 }
  0x39   :  { %309 = vmatpush3.bf16.msra.mxu0 %v368_v8  ;;  %329 = vmatpush3.bf16.msra.mxu1 %v368_v8 }
  0x3a   :  { %334 = vmatprep.subr.bf16.mxu0 %v439_v0 }
  0x3c   :  { %311 = vmatmul.mubr.bf16.vlgmr.msra.gmra.mxu0 %v67_v10 }
  0x3d   :  { %335 = vmatpush3.bf16.msra.mxu0 %v361_v1  ;;  %350 = vmatprep.mubr.msk.bf16.mxu0 %vm440_vm0, %v439_v0 }
  0x3e   :  { %336 = vmatprep.subr.bf16.mxu0 %v439_v0 }
  0x41   :  { %337 = vmatpush3.bf16.msra.mxu0 %v362_v2 }
  0x42   :  { %338 = vmatprep.subr.bf16.mxu0 %v439_v0 }
  0x45   :  { %339 = vmatpush3.bf16.msra.mxu0 %v363_v3 }
  0x46   :  { %340 = vmatprep.subr.bf16.mxu0 %v439_v0 }
  0x49   :  { %341 = vmatpush3.bf16.msra.mxu0 %v364_v4 }
  0x4a   :  { %342 = vmatprep.subr.bf16.mxu0 %v439_v0 }
  0x4d   :  { %343 = vmatpush3.bf16.msra.mxu0 %v365_v5 }
  0x4e   :  { %344 = vmatprep.subr.bf16.mxu0 %v439_v0 }
  0x51   :  { %345 = vmatpush3.bf16.msra.mxu0 %v366_v6 }
  0x52   :  { %346 = vmatprep.subr.bf16.mxu0 %v439_v0 }
  0x55   :  { %347 = vmatpush3.bf16.msra.mxu0 %v367_v7 }
  0x56   :  { %348 = vmatprep.subr.bf16.mxu0 %v439_v0 }
  0x59   :  { %349 = vmatpush3.bf16.msra.mxu0 %v368_v8 }
  0xfc   :  { %v150_v13 = vpop.f32.mrf.mxu0 }
  0xfd   :  { %v156_v14 = vadd.f32 %v150_v13, %v50_v12 }
  0xfe   :  { %v312_v15 = vpop.f32.mrf.mxu0 }
  0xff   :  { %v157_v16 = vpack.c.bf16 %v156_v14, %v156_v14 }
 0x100   :  { %v153_v17 = vpop.f32.mrf.mxu0 }
 0x101   :  { %331 = vmatmul.mubr.bf16.vlgmr.msra.gmra.mxu1 %v157_v16 }
 0x102   :  { %v313_v18 = vpop.f32.mrf.mxu0 }
 0x1c1   :  { %v192_v19 = vpop.f32.mrf.mxu1 }
 0x1c2   :  { %v198_v20 = vadd.f32 %v192_v19, %v50_v12 }
 0x1c3   :  { %v332_v21 = vpop.f32.mrf.mxu1 }
 0x1c4   :  { %v199_v22 = vpack.c.bf16 %v198_v20, %v198_v20 }
 0x1c5   :  { %v195_v23 = vpop.f32.mrf.mxu1 }
 0x1c6   :  { %351 = vmatmul.mubr.bf16.vlgmr.msra.gmra.mxu0 %v199_v22 }
 0x1c7   :  { %v333_v24 = vpop.f32.mrf.mxu1 }
 0x286   :  { %v234_v25 = vpop.f32.mrf.mxu0 }
 0x287   :  { %v240_v26 = vadd.f32 %v234_v25, %v50_v12 }
 0x288   :  { %v352_v27 = vpop.f32.mrf.mxu0 }
 0x289   :  { %241 = vst [vmem:[#allocation7] sm:$0xff] %v240_v26 }
 0x28a   :  { %v237_v28 = vpop.f32.mrf.mxu0 }
 0x28b   :  { %420 = shalt.err (!%p417_p0)
}
 0x28c   :  { %251 = dma.vmem_to_hbm [thread:$0]  %s249_s25, 128, %s480_s3, [#allocation4]   ;;  %v353_v29 = vpop.f32.mrf.mxu0 }
 0x28d   :  { %433 = dma.done.wait [#allocation4], 128  }
 0x28e   :  { %434 = vsyncadd [#allocation4], 4294967168 }
 0x28f   :  { %255 = vsyncpa [#allocation3], 1 }
 0x290   :  { %256 = vsyncpa [#allocation6], 1 }
 0x291   :  { %257 = vsyncpa [#allocation4], 1 }

</bundles_post_ra>
